<compile_context>
chip_gen: v7x
topology: tpu7x:2x2x1
jax: 0.10.0
libtpu: 0.0.40
codegen_flags: <defaults>
</compile_context>

<pallas_src>
import functools

import jax
import jax.numpy as jnp
from jax import lax
from jax.experimental import pallas as pl
from jax.experimental.pallas import tpu as pltpu


_LANES = 128
_TARGET_BLOCK_BYTES = 2 * 1024 * 1024   # per-input DMA block, native dtype
_CHUNK_ROWS = 512                       # rows per in-kernel accumulation chunk
_MAX_SMALL_BLOCK_ELEMS = 256 * 1024     # f32-temp budget when samples are packed
_MAX_BLOCK_SAMPLES = 128
_EPS = 1e-9


def _cdiv(a, b):
    return (a + b - 1) // b


def _round_up(a, b):
    return _cdiv(a, b) * b


def _soft_dice_kernel(logits_ref, targets_ref, inter_ref, s1_ref, s2_ref, *,
                      block_r, chunk_r, n_chunks, num_k_inner, d_valid,
                      needs_mask):
    # Grid: (split s [parallel], batch-block b [parallel], feature-tile k [arbitrary]).
    k = pl.program_id(2)

    # Reset the (resident) output accumulators at the start of each (s, b) block.
    @pl.when(k == 0)
    def _init():
        inter_ref[...] = jnp.zeros_like(inter_ref)
        s1_ref[...] = jnp.zeros_like(s1_ref)
        s2_ref[...] = jnp.zeros_like(s2_ref)

    # Global feature-tile index: split s owns a contiguous range of tiles.
    k_glob = pl.program_id(0) * num_k_inner + k
    row_base = k_glob * block_r   # absolute first row of this block (per sample)

    def accumulate(c, carry):
        if n_chunks == 1:
            x = logits_ref[...]
            t = targets_ref[...]
        else:
            r0 = pl.multiple_of(c * chunk_r, chunk_r)
            x = logits_ref[:, pl.ds(r0, chunk_r), :]
            t = targets_ref[:, pl.ds(r0, chunk_r), :]

        # In-kernel upcast: inputs stream in their native dtype (halves HBM
        # traffic for bf16/int8); arithmetic is f32 (v5e-safe).
        x = x.astype(jnp.float32)
        t = t.astype(jnp.float32)
        # Single-EUP-push sigmoid: sigmoid(x) = 0.5 * (tanh(x/2) + 1).
        p = 0.5 * (jnp.tanh(0.5 * x) + 1.0)

        if needs_mask:
            # Mask the feature tail (lane tail + rows past the real data in a
            # partially out-of-bounds last tile) with a flat-index compare.
            ridx = lax.broadcasted_iota(jnp.int32, (chunk_r, _LANES), 0)
            lidx = lax.broadcasted_iota(jnp.int32, (chunk_r, _LANES), 1)
            flat = (row_base + c * chunk_r) * _LANES + ridx * _LANES + lidx
            valid = (flat < d_valid)[None, :, :]
            p = jnp.where(valid, p, 0.0)
            t = jnp.where(valid, t, 0.0)

        bn = p.shape[0]
        g_full = chunk_r // 8
        rem = chunk_r % 8
        if g_full > 0:
            # Lane/sublane-dense partial sums: the (8, 128) regrouping is
            # tile-aligned (free re-view) and the axis-1 sum is pure VPU adds;
            # the cross-lane reduction is deferred to the JAX wrapper.
            pf = p[:, : g_full * 8, :].reshape(bn, g_full, 8, _LANES)
            tf = t[:, : g_full * 8, :].reshape(bn, g_full, 8, _LANES)
            inter_ref[...] += jnp.sum(pf * tf, axis=1)
            s1_ref[...] += jnp.sum(pf, axis=1)
            s2_ref[...] += jnp.sum(tf, axis=1)
        if rem > 0:
            # Remainder rows (only in the small-feature regime where the row
            # block equals the full, possibly non-multiple-of-8, row count).
            pr = p[:, g_full * 8:, :]
            tr = t[:, g_full * 8:, :]
            inter_ref[:, :rem, :] += pr * tr
            s1_ref[:, :rem, :] += pr
            s2_ref[:, :rem, :] += tr
        return carry

    if n_chunks == 1:
        accumulate(0, 0)
    else:
        lax.fori_loop(0, n_chunks, accumulate, 0)


@jax.jit
def soft_dice_loss(logits, targets):
    """logits, targets: (N, ...) arrays (any dtype). Returns scalar f32 loss."""
    n = logits.shape[0]
    d = 1
    for s in logits.shape[1:]:
        d *= s

    r_up = _cdiv(d, _LANES)
    logits2d = logits.reshape(n, d)
    targets2d = targets.reshape(n, d)
    if d != r_up * _LANES:
        # TODO(synk): this lane-tail zero-pad copies the inputs once; it is only
        # hit when the flattened feature size is not a multiple of 128.  The
        # padded elements are masked out inside the kernel, so zero padding is
        # safe for any dtype (no -1e30-into-int hazard).
        pad = r_up * _LANES - d
        logits2d = jnp.pad(logits2d, ((0, 0), (0, pad)))
        targets2d = jnp.pad(targets2d, ((0, 0), (0, pad)))
    logits3d = logits2d.reshape(n, r_up, _LANES)
    targets3d = targets2d.reshape(n, r_up, _LANES)

    l_isz = jnp.dtype(logits.dtype).itemsize
    t_isz = jnp.dtype(targets.dtype).itemsize
    max_isz = max(l_isz, t_isz)

    per_sample_bytes = r_up * _LANES * max_isz
    if per_sample_bytes >= _TARGET_BLOCK_BYTES:
        # Large-feature regime: 1 sample per block, ~2 MiB native-dtype row
        # tiles, chunked accumulation keeps f32 temporaries ~1 MiB.
        block_n = 1
        chunk_r = _CHUNK_ROWS
        target_rows = max(chunk_r, _TARGET_BLOCK_BYTES // (_LANES * max_isz))
        num_k = _cdiv(r_up, target_rows)
        block_r = _round_up(_cdiv(r_up, num_k), chunk_r)   # balanced tiles
        num_k = _cdiv(r_up, block_r)
    else:
        # Small-feature regime: whole feature axis in one block; pack several
        # batch samples per block so each DMA stays large.
        block_r = r_up          # equals full row extent (no (8,128) issue)
        chunk_r = block_r
        num_k = 1
        per_sample_elems = r_up * _LANES
        block_n = min(
            n, _MAX_BLOCK_SAMPLES,
            max(1, _TARGET_BLOCK_BYTES // per_sample_bytes),
            max(1, _MAX_SMALL_BLOCK_ELEMS // per_sample_elems))
        block_n = _cdiv(n, _cdiv(n, block_n))   # balance batch blocks
    n_chunks = block_r // chunk_r

    # Split the feature reduction across a leading "parallel" axis so a
    # multi-TensorCore chip (v7x) is busy even at batch size 1.  Only done
    # when the tile count splits evenly (zero redundant work on 1-TC chips).
    if num_k >= 2 and num_k % 2 == 0:
        n_split, num_k_inner = 2, num_k // 2
    else:
        n_split, num_k_inner = 1, num_k

    num_b = _cdiv(n, block_n)
    needs_mask = (num_k * block_r * _LANES) != d

    kernel = functools.partial(
        _soft_dice_kernel, block_r=block_r, chunk_r=chunk_r, n_chunks=n_chunks,
        num_k_inner=num_k_inner, d_valid=d, needs_mask=needs_mask)

    grid = (n_split, num_b, num_k_inner)
    part_shape = jax.ShapeDtypeStruct((n_split, n, 8, _LANES), jnp.float32)
    in_spec = pl.BlockSpec((block_n, block_r, _LANES),
                           lambda s, b, k: (b, s * num_k_inner + k, 0))
    out_spec = pl.BlockSpec((None, block_n, 8, _LANES),
                            lambda s, b, k: (s, b, 0, 0))

    inter_p, s1_p, s2_p = pl.pallas_call(
        kernel,
        out_shape=(part_shape, part_shape, part_shape),
        grid_spec=pltpu.PrefetchScalarGridSpec(
            num_scalar_prefetch=0,
            grid=grid,
            in_specs=[in_spec, in_spec],
            out_specs=(out_spec, out_spec, out_spec),
        ),
        compiler_params=pltpu.CompilerParams(
            dimension_semantics=("parallel", "parallel", "arbitrary"),
            vmem_limit_bytes=32 * 1024 * 1024,
        ),
        cost_estimate=pl.CostEstimate(
            flops=6 * n * d,
            transcendentals=n * d,
            bytes_accessed=n * d * (l_isz + t_isz)
            + 3 * n_split * n * 8 * _LANES * 4,
        ),
    )(logits3d, targets3d)

    # Cheap finalize in JAX: cross-lane reduction of the lane-dense partials,
    # dice ratio, and the batch mean.
    inter = jnp.sum(inter_p, axis=(0, 2, 3))
    s1 = jnp.sum(s1_p, axis=(0, 2, 3))
    s2 = jnp.sum(s2_p, axis=(0, 2, 3))
    eps = jnp.float32(_EPS)
    score = (2.0 * inter + eps) / (s1 + s2 + eps)
    return jnp.mean(1.0 - score)


def soft_dice_loss_ref(logits, targets):
    """Pure-JAX reference mirroring the PyTorch module."""
    eps = 1e-9
    n = logits.shape[0]
    probs = jax.nn.sigmoid(logits.astype(jnp.float32))
    m1 = probs.reshape(n, -1)
    m2 = targets.reshape(n, -1).astype(jnp.float32)
    inter = jnp.sum(m1 * m2, axis=1)
    union = jnp.sum(m1, axis=1) + jnp.sum(m2, axis=1)
    score = (2.0 * inter + eps) / (union + eps)
    return jnp.mean(1.0 - score)


def _check(loss, ref, name):
    loss = jax.block_until_ready(loss)
    assert jnp.allclose(loss, ref, rtol=2e-4, atol=1e-6), (name, loss, ref)


if __name__ == "__main__":
    key = jax.random.PRNGKey(0)
    k1, k2, k3, k4, k5, k6 = jax.random.split(key, 6)

    # 1) Small NCHW case (d = 1024, 128-aligned; sample-packing path).
    N, C, H, W = 2, 4, 16, 16
    logits = jax.random.normal(k1, (N, C, H, W), dtype=jnp.float32)
    targets = (jax.random.uniform(k2, (N, C, H, W)) > 0.5).astype(jnp.float32)
    _check(soft_dice_loss(logits, targets),
           soft_dice_loss_ref(logits, targets), "nchw_f32")

    # 2) Non-128-aligned feature size + narrow dtypes (bf16 logits, int8 targets).
    logits_b = jax.random.normal(k3, (3, 5, 7, 11), dtype=jnp.float32).astype(jnp.bfloat16)
    targets_b = (jax.random.uniform(k4, (3, 5, 7, 11)) > 0.5).astype(jnp.int8)
    _check(soft_dice_loss(logits_b, targets_b),
           soft_dice_loss_ref(logits_b, targets_b), "odd_bf16_int8")

    # 3) Single large sample: exercises the big-tile regime, the chunked
    #    accumulation loop, the 2-way core split and the row-tail masking.
    Dbig = 537088  # 4196 rows of 128 lanes; not a multiple of the row tile
    logits_c = jax.random.normal(k5, (1, Dbig), dtype=jnp.float32)
    targets_c = (jax.random.uniform(k6, (1, Dbig)) > 0.5).astype(jnp.float32)
    _check(soft_dice_loss(logits_c, targets_c),
           soft_dice_loss_ref(logits_c, targets_c), "large_single_sample")

    print("KERNEL_OK")
</pallas_src>

<mosaic_0001>
module attributes {stable_mosaic.version = 11 : i64} {
  func.func @_soft_dice_kernel(%arg0: i32, %arg1: i32, %arg2: i32, %arg3: memref<2x8x128xf32, #tpu.memory_space<vmem>>, %arg4: memref<2x8x128xf32, #tpu.memory_space<vmem>>, %arg5: memref<1x2x8x128xf32, #tpu.memory_space<vmem>>, %arg6: memref<1x2x8x128xf32, #tpu.memory_space<vmem>>, %arg7: memref<1x2x8x128xf32, #tpu.memory_space<vmem>>) attributes {dimension_semantics = [#tpu.dimension_semantics<parallel>, #tpu.dimension_semantics<parallel>, #tpu.dimension_semantics<arbitrary>], iteration_bounds = array<i64: 1, 1, 1>, scalar_prefetch = 0 : i64, scratch_operands = 0 : i64, tpu.core_type = #tpu.core_type<tc>, window_params = [{transform_indices = @transform_0, window_bounds = array<i64: 2, 8, 128>}, {transform_indices = @transform_1, window_bounds = array<i64: 2, 8, 128>}, {transform_indices = @transform_2, window_bounds = array<i64: 1, 2, 8, 128>}, {transform_indices = @transform_3, window_bounds = array<i64: 1, 2, 8, 128>}, {transform_indices = @transform_4, window_bounds = array<i64: 1, 2, 8, 128>}]} {
    %c0_i32 = arith.constant 0 : i32
    %0 = arith.cmpi eq, %arg2, %c0_i32 : i32
    %1 = arith.extui %0 : i1 to i32
    %c0_i32_0 = arith.constant 0 : i32
    %2 = arith.cmpi ne, %1, %c0_i32_0 : i32
    scf.if %2 {
      %cst_35 = arith.constant 0.000000e+00 : f32
      %36 = vector.broadcast %cst_35 : f32 to vector<2x8x128xf32>
      %c0_36 = arith.constant 0 : index
      %c0_37 = arith.constant 0 : index
      %c0_38 = arith.constant 0 : index
      %c0_39 = arith.constant 0 : index
      %37 = vector.load %arg5[%c0_36, %c0_37, %c0_38, %c0_39] : memref<1x2x8x128xf32, #tpu.memory_space<vmem>>, vector<1x2x8x128xf32>
      %38 = vector.shape_cast %37 : vector<1x2x8x128xf32> to vector<2x8x128xf32>
      %39 = vector.shape_cast %36 : vector<2x8x128xf32> to vector<1x2x8x128xf32>
      tpu.vector_store %arg5[%c0_36, %c0_37, %c0_38, %c0_39], %39 {strides = array<i32>} : memref<1x2x8x128xf32, #tpu.memory_space<vmem>>, vector<1x2x8x128xf32>,
      %cst_40 = arith.constant 0.000000e+00 : f32
      %40 = vector.broadcast %cst_40 : f32 to vector<2x8x128xf32>
      %c0_41 = arith.constant 0 : index
      %c0_42 = arith.constant 0 : index
      %c0_43 = arith.constant 0 : index
      %c0_44 = arith.constant 0 : index
      %41 = vector.load %arg6[%c0_41, %c0_42, %c0_43, %c0_44] : memref<1x2x8x128xf32, #tpu.memory_space<vmem>>, vector<1x2x8x128xf32>
      %42 = vector.shape_cast %41 : vector<1x2x8x128xf32> to vector<2x8x128xf32>
      %43 = vector.shape_cast %40 : vector<2x8x128xf32> to vector<1x2x8x128xf32>
      tpu.vector_store %arg6[%c0_41, %c0_42, %c0_43, %c0_44], %43 {strides = array<i32>} : memref<1x2x8x128xf32, #tpu.memory_space<vmem>>, vector<1x2x8x128xf32>,
      %cst_45 = arith.constant 0.000000e+00 : f32
      %44 = vector.broadcast %cst_45 : f32 to vector<2x8x128xf32>
      %c0_46 = arith.constant 0 : index
      %c0_47 = arith.constant 0 : index
      %c0_48 = arith.constant 0 : index
      %c0_49 = arith.constant 0 : index
      %45 = vector.load %arg7[%c0_46, %c0_47, %c0_48, %c0_49] : memref<1x2x8x128xf32, #tpu.memory_space<vmem>>, vector<1x2x8x128xf32>
      %46 = vector.shape_cast %45 : vector<1x2x8x128xf32> to vector<2x8x128xf32>
      %47 = vector.shape_cast %44 : vector<2x8x128xf32> to vector<1x2x8x128xf32>
      tpu.vector_store %arg7[%c0_46, %c0_47, %c0_48, %c0_49], %47 {strides = array<i32>} : memref<1x2x8x128xf32, #tpu.memory_space<vmem>>, vector<1x2x8x128xf32>,
    } else {
    }
    %c0 = arith.constant 0 : index
    %c0_1 = arith.constant 0 : index
    %c0_2 = arith.constant 0 : index
    %3 = vector.load %arg3[%c0, %c0_1, %c0_2] : memref<2x8x128xf32, #tpu.memory_space<vmem>>, vector<2x8x128xf32>
    %c0_3 = arith.constant 0 : index
    %c0_4 = arith.constant 0 : index
    %c0_5 = arith.constant 0 : index
    %4 = vector.load %arg4[%c0_3, %c0_4, %c0_5] : memref<2x8x128xf32, #tpu.memory_space<vmem>>, vector<2x8x128xf32>
    %cst = arith.constant 5.000000e-01 : f32
    %5 = vector.broadcast %cst : f32 to vector<2x8x128xf32>
    %6 = arith.mulf %5, %3 : vector<2x8x128xf32>
    %7 = math.tanh %6 : vector<2x8x128xf32>
    %cst_6 = arith.constant 1.000000e+00 : f32
    %8 = vector.broadcast %cst_6 : f32 to vector<2x8x128xf32>
    %9 = arith.addf %7, %8 : vector<2x8x128xf32>
    %cst_7 = arith.constant 5.000000e-01 : f32
    %10 = vector.broadcast %cst_7 : f32 to vector<2x8x128xf32>
    %11 = arith.mulf %10, %9 : vector<2x8x128xf32>
    %12 = vector.shape_cast %11 : vector<2x8x128xf32> to vector<2x1x8x128xf32>
    %13 = vector.shape_cast %4 : vector<2x8x128xf32> to vector<2x1x8x128xf32>
    %c0_8 = arith.constant 0 : index
    %c0_9 = arith.constant 0 : index
    %c0_10 = arith.constant 0 : index
    %c0_11 = arith.constant 0 : index
    %14 = vector.load %arg5[%c0_8, %c0_9, %c0_10, %c0_11] : memref<1x2x8x128xf32, #tpu.memory_space<vmem>>, vector<1x2x8x128xf32>
    %15 = vector.shape_cast %14 : vector<1x2x8x128xf32> to vector<2x8x128xf32>
    %16 = arith.mulf %12, %13 : vector<2x1x8x128xf32>
    %cst_12 = arith.constant dense<0.000000e+00> : vector<2x8x128xf32>
    %17 = vector.multi_reduction <add>, %16, %cst_12 [1] : vector<2x1x8x128xf32> to vector<2x8x128xf32>
    %18 = arith.addf %15, %17 : vector<2x8x128xf32>
    %c0_13 = arith.constant 0 : index
    %c0_14 = arith.constant 0 : index
    %c0_15 = arith.constant 0 : index
    %c0_16 = arith.constant 0 : index
    %19 = vector.load %arg5[%c0_13, %c0_14, %c0_15, %c0_16] : memref<1x2x8x128xf32, #tpu.memory_space<vmem>>, vector<1x2x8x128xf32>
    %20 = vector.shape_cast %19 : vector<1x2x8x128xf32> to vector<2x8x128xf32>
    %21 = vector.shape_cast %18 : vector<2x8x128xf32> to vector<1x2x8x128xf32>
    tpu.vector_store %arg5[%c0_13, %c0_14, %c0_15, %c0_16], %21 {strides = array<i32>} : memref<1x2x8x128xf32, #tpu.memory_space<vmem>>, vector<1x2x8x128xf32>,
    %c0_17 = arith.constant 0 : index
    %c0_18 = arith.constant 0 : index
    %c0_19 = arith.constant 0 : index
    %c0_20 = arith.constant 0 : index
    %22 = vector.load %arg6[%c0_17, %c0_18, %c0_19, %c0_20] : memref<1x2x8x128xf32, #tpu.memory_space<vmem>>, vector<1x2x8x128xf32>
    %23 = vector.shape_cast %22 : vector<1x2x8x128xf32> to vector<2x8x128xf32>
    %cst_21 = arith.constant dense<0.000000e+00> : vector<2x8x128xf32>
    %24 = vector.multi_reduction <add>, %12, %cst_21 [1] : vector<2x1x8x128xf32> to vector<2x8x128xf32>
    %25 = arith.addf %23, %24 : vector<2x8x128xf32>
    %c0_22 = arith.constant 0 : index
    %c0_23 = arith.constant 0 : index
    %c0_24 = arith.constant 0 : index
    %c0_25 = arith.constant 0 : index
    %26 = vector.load %arg6[%c0_22, %c0_23, %c0_24, %c0_25] : memref<1x2x8x128xf32, #tpu.memory_space<vmem>>, vector<1x2x8x128xf32>
    %27 = vector.shape_cast %26 : vector<1x2x8x128xf32> to vector<2x8x128xf32>
    %28 = vector.shape_cast %25 : vector<2x8x128xf32> to vector<1x2x8x128xf32>
    tpu.vector_store %arg6[%c0_22, %c0_23, %c0_24, %c0_25], %28 {strides = array<i32>} : memref<1x2x8x128xf32, #tpu.memory_space<vmem>>, vector<1x2x8x128xf32>,
    %c0_26 = arith.constant 0 : index
    %c0_27 = arith.constant 0 : index
    %c0_28 = arith.constant 0 : index
    %c0_29 = arith.constant 0 : index
    %29 = vector.load %arg7[%c0_26, %c0_27, %c0_28, %c0_29] : memref<1x2x8x128xf32, #tpu.memory_space<vmem>>, vector<1x2x8x128xf32>
    %30 = vector.shape_cast %29 : vector<1x2x8x128xf32> to vector<2x8x128xf32>
    %cst_30 = arith.constant dense<0.000000e+00> : vector<2x8x128xf32>
    %31 = vector.multi_reduction <add>, %13, %cst_30 [1] : vector<2x1x8x128xf32> to vector<2x8x128xf32>
    %32 = arith.addf %30, %31 : vector<2x8x128xf32>
    %c0_31 = arith.constant 0 : index
    %c0_32 = arith.constant 0 : index
    %c0_33 = arith.constant 0 : index
    %c0_34 = arith.constant 0 : index
    %33 = vector.load %arg7[%c0_31, %c0_32, %c0_33, %c0_34] : memref<1x2x8x128xf32, #tpu.memory_space<vmem>>, vector<1x2x8x128xf32>
    %34 = vector.shape_cast %33 : vector<1x2x8x128xf32> to vector<2x8x128xf32>
    %35 = vector.shape_cast %32 : vector<2x8x128xf32> to vector<1x2x8x128xf32>
    tpu.vector_store %arg7[%c0_31, %c0_32, %c0_33, %c0_34], %35 {strides = array<i32>} : memref<1x2x8x128xf32, #tpu.memory_space<vmem>>, vector<1x2x8x128xf32>,
    return
  }
  func.func @transform_0(%arg0: i32, %arg1: i32, %arg2: i32) -> (i32, i32, i32) {
    %c1_i32 = arith.constant 1 : i32
    %0 = arith.muli %arg0, %c1_i32 : i32
    %1 = arith.addi %0, %arg2 : i32
    %c0_i32 = arith.constant 0 : i32
    %c0_i32_0 = arith.constant 0 : i32
    return %arg1, %1, %c0_i32 : i32, i32, i32
  }
  func.func @transform_1(%arg0: i32, %arg1: i32, %arg2: i32) -> (i32, i32, i32) {
    %c1_i32 = arith.constant 1 : i32
    %0 = arith.muli %arg0, %c1_i32 : i32
    %1 = arith.addi %0, %arg2 : i32
    %c0_i32 = arith.constant 0 : i32
    %c0_i32_0 = arith.constant 0 : i32
    return %arg1, %1, %c0_i32 : i32, i32, i32
  }
  func.func @transform_2(%arg0: i32, %arg1: i32, %arg2: i32) -> (i32, i32, i32, i32) {
    %c0_i32 = arith.constant 0 : i32
    %c0_i32_0 = arith.constant 0 : i32
    %c0_i32_1 = arith.constant 0 : i32
    return %arg0, %arg1, %c0_i32, %c0_i32_0 : i32, i32, i32, i32
  }
  func.func @transform_3(%arg0: i32, %arg1: i32, %arg2: i32) -> (i32, i32, i32, i32) {
    %c0_i32 = arith.constant 0 : i32
    %c0_i32_0 = arith.constant 0 : i32
    %c0_i32_1 = arith.constant 0 : i32
    return %arg0, %arg1, %c0_i32, %c0_i32_0 : i32, i32, i32, i32
  }
  func.func @transform_4(%arg0: i32, %arg1: i32, %arg2: i32) -> (i32, i32, i32, i32) {
    %c0_i32 = arith.constant 0 : i32
    %c0_i32_0 = arith.constant 0 : i32
    %c0_i32_1 = arith.constant 0 : i32
    return %arg0, %arg1, %c0_i32, %c0_i32_0 : i32, i32, i32, i32
  }
}

</mosaic_0001>

<bundles_post_ra>
// kernel: soft_dice_loss.1
= control target key start
LH: loop header
LB: loop body
LE: loop exit
PB: predicated region body
PF: predicated region fallthrough
CT: control target
= control target key end

     0   :  { %s180_s0 = inlined_call_operand.vmem [shape: f32[2,8,128], index: 0, kind: input, shape index: {}]   ;;  %s181_s1 = inlined_call_operand.vmem [shape: f32[2,8,128], index: 1, kind: input, shape index: {}]   ;;  %s182_s4 = inlined_call_operand.vmem [shape: f32[1,2,8,128], index: 4, kind: output, shape index: {2}]   ;;  %s183_s3 = inlined_call_operand.vmem [shape: f32[1,2,8,128], index: 3, kind: output, shape index: {1}]   ;;  %s184_s2 = inlined_call_operand.vmem [shape: f32[1,2,8,128], index: 2, kind: output, shape index: {0}]  }
   0x1   :  { %v58_v0 = vld [vmem:[%s180_s0] sm:$0xff]  ;;  %v59_v2 = vld [vmem:[%s180_s0 + $0x8] sm:$0xff] }
   0x2   :  { %v60_v1 = vld [vmem:[%s181_s1] sm:$0xff]  ;;  %v62_v3 = vmul.f32 0.5, %v58_v0  ;;  %v61_v4 = vld [vmem:[%s181_s1 + $0x8] sm:$0xff]  ;;  %v63_v5 = vmul.f32 0.5, %v59_v2 }
   0x3   :  { %94 = vst [vmem:[%s182_s4] sm:$0xff] %v60_v1  ;;  %95 = vst [vmem:[%s182_s4 + $0x8] sm:$0xff] %v61_v4 }
   0x4   :  { %121 = vtanh.f32 %v62_v3 }
   0x5   :  { %123 = vtanh.f32 %v63_v5 }
   0xe   :  { %v122_v6 = vpop.eup %121 }
   0xf   :  { %v124_v7 = vpop.eup %123  ;;  %v66_v8 = vadd.f32 1.0, %v122_v6 }
  0x10   :  { %v67_v9 = vadd.f32 1.0, %v124_v7 }
  0x11   :  { %v68_v10 = vmul.f32 0.5, %v66_v8 }
  0x12   :  { %v69_v11 = vmul.f32 0.5, %v67_v9 }
  0x13   :  { %v72_v12 = vmul.f32 %v68_v10, %v60_v1  ;;  %86 = vst [vmem:[%s183_s3] sm:$0xff] %v68_v10 }
  0x14   :  { %v73_v13 = vmul.f32 %v69_v11, %v61_v4  ;;  %87 = vst [vmem:[%s183_s3 + $0x8] sm:$0xff] %v69_v11 }
  0x15   :  { %78 = vst [vmem:[%s184_s2] sm:$0xff] %v72_v12 }
  0x16   :  { %79 = vst [vmem:[%s184_s2 + $0x8] sm:$0xff] %v73_v13 }

</bundles_post_ra>
